<compile_context>
chip_gen: v5e
topology: v5e:2x2
jax: 0.10.0
libtpu: 0.0.40
codegen_flags: <defaults>
</compile_context>

<pallas_src>
import functools

import jax
import jax.numpy as jnp
from jax.experimental import pallas as pl
from jax.experimental.pallas import tpu as pltpu


def _conv_mm_kernel(p_ref, w_ref, b_ref, o_ref, *, relu):
    # p_ref : (K*K*Cin, TS)   im2col patch tile (contraction x spatial lanes)
    # w_ref : (Cout, K*K*Cin) packed conv weight (VMEM-resident)
    # b_ref : (Cout, 1)       f32 bias column     (VMEM-resident)
    # o_ref : (Cout, TS)      lane-dense output tile
    acc = jax.lax.dot_general(
        w_ref[...], p_ref[...],
        dimension_numbers=(((1,), (0,)), ((), ())),
        preferred_element_type=jnp.float32,
    )                                   # (Cout, TS), f32 accumulation on MXU
    acc = acc + b_ref[...]              # (Cout, 1) broadcast along lanes
    if relu:
        acc = jnp.maximum(acc, 0.0)
    o_ref[...] = acc.astype(o_ref.dtype)


def _pick_spatial_tile(S, KKC, Cout, itemsize):
    """Largest lane-dense (multiple-of-128) divisor of S within a VMEM budget."""
    if S % 128 != 0:
        return S                        # full extent is always a legal block
    budget = 8 * 1024 * 1024            # per-tile working-set target (bytes)
    ts = 128
    while (S % (ts * 2) == 0
           and S // (ts * 2) >= 2
           # 2x for double buffering of the patch tile + the output tile
           and 2 * (KKC + Cout) * (ts * 2) * itemsize <= budget):
        ts *= 2
    return ts


def basic_conv(x_nchw, weight, bias, *, relu=True):
    """BasicConv forward.

    x_nchw : (N, Cin, H, W)        -- PyTorch NCHW convention
    weight : (Cout, Cin, K, K)     -- PyTorch OIHW conv weight layout
    bias   : (Cout,)
    returns: (N, Cout, H_out, W_out)   (H_out == H, W_out == W for odd K)
    """
    N, Cin, H, W = x_nchw.shape
    Cout, Cin_w, K, K2 = weight.shape
    assert Cin == Cin_w and K == K2

    p = K // 2
    H_out = H + 2 * p - K + 1
    W_out = W + 2 * p - K + 1
    S = H_out * W_out
    KKC = K * K * Cin

    # Zero-pad spatial dims in NCHW (no layout transpose of the activation).
    x_pad = jnp.pad(x_nchw, ((0, 0), (0, 0), (p, p), (p, p)))

    # Lane-dense im2col:
    #   patches[n, (kh*K + kw)*Cin + ci, h*W_out + w] = x_pad[n, ci, h+kh, w+kw]
    taps = [x_pad[:, :, kh:kh + H_out, kw:kw + W_out]
            for kh in range(K) for kw in range(K)]
    patches = jnp.stack(taps, axis=1).reshape(N, KKC, S)

    # Weight packed to match the patch flattening: w_mat[co, (kh*K+kw)*Cin + ci]
    w_mat = jnp.transpose(weight, (0, 2, 3, 1)).reshape(Cout, KKC)
    # Bias kept in f32 so the epilogue add happens in the f32 accumulator.
    b_col = bias.astype(jnp.float32).reshape(Cout, 1)

    TS = _pick_spatial_tile(S, KKC, Cout, jnp.dtype(x_nchw.dtype).itemsize)
    nS = S // TS

    kernel = functools.partial(_conv_mm_kernel, relu=bool(relu))

    out = pl.pallas_call(
        kernel,
        out_shape=jax.ShapeDtypeStruct((N, Cout, S), x_nchw.dtype),
        grid_spec=pltpu.PrefetchScalarGridSpec(
            num_scalar_prefetch=0,
            grid=(N, nS),
            in_specs=[
                # batch dim squeezed; spatial tiled along lanes
                pl.BlockSpec((None, KKC, TS), lambda n, s: (n, 0, s)),
                # weight / bias: constant block index -> resident in VMEM
                pl.BlockSpec((Cout, KKC), lambda n, s: (0, 0)),
                pl.BlockSpec((Cout, 1), lambda n, s: (0, 0)),
            ],
            out_specs=pl.BlockSpec((None, Cout, TS), lambda n, s: (n, 0, s)),
        ),
        compiler_params=pltpu.CompilerParams(
            dimension_semantics=("parallel", "parallel"),
            vmem_limit_bytes=32 * 1024 * 1024,
        ),
        cost_estimate=pl.CostEstimate(
            flops=2 * N * Cout * KKC * S,
            transcendentals=0,
            bytes_accessed=(patches.size * patches.dtype.itemsize
                            + w_mat.size * w_mat.dtype.itemsize
                            + N * Cout * S * jnp.dtype(x_nchw.dtype).itemsize),
        ),
    )(patches, w_mat, b_col)

    # (N, Cout, H_out*W_out) -> (N, Cout, H_out, W_out): pure reshape.
    return out.reshape(N, Cout, H_out, W_out)


def _reference(x_nchw, weight, bias, *, relu=True):
    """Pure-JAX reference (lax conv) for correctness check."""
    K = weight.shape[-1]
    p = K // 2
    out = jax.lax.conv_general_dilated(
        x_nchw.astype(jnp.float32),
        weight.astype(jnp.float32),
        window_strides=(1, 1),
        padding=((p, p), (p, p)),
        dimension_numbers=("NCHW", "OIHW", "NCHW"),
    )
    out = out + bias.astype(jnp.float32)[None, :, None, None]
    if relu:
        out = jnp.maximum(out, 0.0)
    return out


if __name__ == "__main__":
    key = jax.random.PRNGKey(0)
    k_x, k_w, k_b = jax.random.split(key, 3)

    # Shapes consistent with BasicConv(in_channel=4, out_channel=8, kernel_size=3)
    N, Cin, H, W = 2, 4, 16, 16
    Cout, K = 8, 3

    x = jax.random.normal(k_x, (N, Cin, H, W), dtype=jnp.float32)
    weight = jax.random.normal(k_w, (Cout, Cin, K, K), dtype=jnp.float32) * 0.1
    bias = jax.random.normal(k_b, (Cout,), dtype=jnp.float32) * 0.1

    # relu=True (module default)
    out = jax.block_until_ready(basic_conv(x, weight, bias, relu=True))
    ref = jax.block_until_ready(_reference(x, weight, bias, relu=True))
    assert out.shape == (N, Cout, H, W)
    assert jnp.allclose(out, ref, atol=1e-4, rtol=1e-4), \
        "mismatch vs reference conv (relu=True)"

    # relu=False path (supported by the module contract)
    out_nr = jax.block_until_ready(basic_conv(x, weight, bias, relu=False))
    ref_nr = jax.block_until_ready(_reference(x, weight, bias, relu=False))
    assert jnp.allclose(out_nr, ref_nr, atol=1e-4, rtol=1e-4), \
        "mismatch vs reference conv (relu=False)"

    print("KERNEL_OK")
</pallas_src>

<mosaic_0001>
module attributes {stable_mosaic.version = 11 : i64} {
  func.func @_conv_mm_kernel(%arg0: i32, %arg1: i32, %arg2: memref<1x36x128xf32, #tpu.memory_space<vmem>>, %arg3: memref<8x36xf32, #tpu.memory_space<vmem>>, %arg4: memref<8x1xf32, #tpu.memory_space<vmem>>, %arg5: memref<1x8x128xf32, #tpu.memory_space<vmem>>) attributes {dimension_semantics = [#tpu.dimension_semantics<parallel>, #tpu.dimension_semantics<parallel>], iteration_bounds = array<i64: 2, 2>, scalar_prefetch = 0 : i64, scratch_operands = 0 : i64, tpu.core_type = #tpu.core_type<tc>, window_params = [{transform_indices = @transform_0, window_bounds = array<i64: 1, 36, 128>}, {pipeline_mode = #tpu.pipeline_mode<synchronous>, transform_indices = @transform_1, window_bounds = array<i64: 8, 36>}, {pipeline_mode = #tpu.pipeline_mode<synchronous>, transform_indices = @transform_2, window_bounds = array<i64: 8, 1>}, {transform_indices = @transform_3, window_bounds = array<i64: 1, 8, 128>}]} {
    %c0 = arith.constant 0 : index
    %c0_0 = arith.constant 0 : index
    %0 = vector.load %arg3[%c0, %c0_0] : memref<8x36xf32, #tpu.memory_space<vmem>>, vector<8x36xf32>
    %c0_1 = arith.constant 0 : index
    %c0_2 = arith.constant 0 : index
    %c0_3 = arith.constant 0 : index
    %1 = vector.load %arg2[%c0_1, %c0_2, %c0_3] : memref<1x36x128xf32, #tpu.memory_space<vmem>>, vector<1x36x128xf32>
    %2 = vector.shape_cast %1 : vector<1x36x128xf32> to vector<36x128xf32>
    %cst = arith.constant dense<0.000000e+00> : vector<8x128xf32>
    %3 = tpu.matmul %0, %2, %cst {dimension_numbers = #tpu.dot_dimension_numbers<[1], [0], [0], [1], [0, 0, 1, 1], [], []>} : vector<8x36xf32>, vector<36x128xf32>, vector<8x128xf32> -> vector<8x128xf32>
    %c0_4 = arith.constant 0 : index
    %c0_5 = arith.constant 0 : index
    %4 = vector.load %arg4[%c0_4, %c0_5] : memref<8x1xf32, #tpu.memory_space<vmem>>, vector<8x1xf32>
    %5 = vector.broadcast %4 : vector<8x1xf32> to vector<8x128xf32>
    %6 = arith.addf %3, %5 : vector<8x128xf32>
    %cst_6 = arith.constant 0.000000e+00 : f32
    %7 = vector.broadcast %cst_6 : f32 to vector<8x128xf32>
    %8 = arith.maximumf %6, %7 : vector<8x128xf32>
    %c0_7 = arith.constant 0 : index
    %c0_8 = arith.constant 0 : index
    %c0_9 = arith.constant 0 : index
    %9 = vector.load %arg5[%c0_7, %c0_8, %c0_9] : memref<1x8x128xf32, #tpu.memory_space<vmem>>, vector<1x8x128xf32>
    %10 = vector.shape_cast %9 : vector<1x8x128xf32> to vector<8x128xf32>
    %11 = vector.shape_cast %8 : vector<8x128xf32> to vector<1x8x128xf32>
    tpu.vector_store %arg5[%c0_7, %c0_8, %c0_9], %11 {strides = array<i32>} : memref<1x8x128xf32, #tpu.memory_space<vmem>>, vector<1x8x128xf32>,
    return
  }
  func.func @transform_0(%arg0: i32, %arg1: i32) -> (i32, i32, i32) {
    %c0_i32 = arith.constant 0 : i32
    %c0_i32_0 = arith.constant 0 : i32
    return %arg0, %c0_i32, %arg1 : i32, i32, i32
  }
  func.func @transform_1(%arg0: i32, %arg1: i32) -> (i32, i32) {
    %c0_i32 = arith.constant 0 : i32
    %c0_i32_0 = arith.constant 0 : i32
    %c0_i32_1 = arith.constant 0 : i32
    return %c0_i32, %c0_i32_0 : i32, i32
  }
  func.func @transform_2(%arg0: i32, %arg1: i32) -> (i32, i32) {
    %c0_i32 = arith.constant 0 : i32
    %c0_i32_0 = arith.constant 0 : i32
    %c0_i32_1 = arith.constant 0 : i32
    return %c0_i32, %c0_i32_0 : i32, i32
  }
  func.func @transform_3(%arg0: i32, %arg1: i32) -> (i32, i32, i32) {
    %c0_i32 = arith.constant 0 : i32
    %c0_i32_0 = arith.constant 0 : i32
    return %arg0, %c0_i32, %arg1 : i32, i32, i32
  }
}

</mosaic_0001>

<bundles_post_ra>
// kernel: tpu_custom_call.1
= control target key start
LH: loop header
LB: loop body
LE: loop exit
PB: predicated region body
PF: predicated region fallthrough
CT: control target
= control target key end

     0   :  { %8 = vsyncpa [#allocation4], 0  ;;  %s725_s0 = inlined_call_operand.vmem [shape: f32[2,36,256], index: 0, kind: input, shape index: {}]   ;;  %s726_s1 = inlined_call_operand.vmem [shape: f32[8,36], index: 1, kind: input, shape index: {}]   ;;  %s727_s2 = inlined_call_operand.vmem [shape: f32[8,1], index: 2, kind: input, shape index: {}]   ;;  %s728_s3 = inlined_call_operand.hbm [shape: f32[2,8,256], index: 3, kind: output, shape index: {}]  }
   0x1   :  { %10 = vsyncpa [#allocation4 + $0x1], 0  ;;  %s585_s12 = smov 0   ;;  %s587_s13 = smov 0  }
   0x2   :  { %s589_s14 = smov 0   ;;  %s591_s15 = smov 0  }
   0x3   :  { %s593_s16 = smov 0   ;;  %s595_s17 = smov 0  }
   0x4   :  { %s597_s18 = smov 0   ;;  %s599_s19 = smov 0  }
   0x5 LB: > { %s378_s20 = sadd.s32 4294967295, %s562_s19   ;;  %s379_s21 = sadd.s32 4294967294, %s562_s19   ;;  %s562_s19 = sphi %s599_s19, %s16_s19   ;;  %s558_s18 = sphi %s597_s18, %s738_s18   ;;  %s554_s17 = sphi %s595_s17, %s737_s17   ;;  %s550_s16 = sphi %s593_s16, %s736_s16   ;;  %s546_s15 = sphi %s591_s15, %s735_s15   ;;  %s542_s14 = sphi %s589_s14, %s734_s14   ;;  %s538_s13 = sphi %s587_s13, %s733_s13   ;;  %s534_s12 = sphi %s585_s12, %s732_s12  }
   0x6   : > { %s25_s22 = sadd.s32 1, %s554_s17  ;;  %s28_s23 = sadd.s32 1, %s558_s18 }
   0x7   : > { %p26_p0 = scmp.ge.s32.totalorder %s25_s22, 2  ;;  %p44_p1 = scmp.ne.s32.totalorder %s542_s14, %s538_s13 }
   0x8   : > { %p45_p2 = scmp.eq.s32.totalorder %s562_s19, 0  ;;  %p118_p5 = scmp.eq.s32.totalorder %s378_s20, 3 }
   0x9   : > { %s740_s22 = smov (%p26_p0, %s25_s22), 0  ;;  %s742_s23 = smov (!%p26_p0, %s28_s23), %s558_s18 }
   0xa   : > { %s33_s24 = ssub.s32 %s554_s17, %s740_s22  ;;  %p637_p3 = por %p45_p2, %p44_p1 }
   0xb   : > { %p30_p4 = scmp.ge.s32.totalorder %s742_s23, 2  ;;  %p123_p6 = scmp.ne.s32.totalorder %s538_s13, %s534_s12 }
   0xc   : > { %p124_p7 = scmp.eq.s32.totalorder %s379_s21, 3  ;;  %p645_p8 = por %p118_p5, %p44_p1 }
   0xd   : > { %s744_s23 = smov (%p30_p4, %s742_s23), 0  ;;  %s37_s30 = sadd.s32 1, %s542_s14 }
   0xe   : > { %p649_p9 = por %p124_p7, %p123_p6  ;;  %s32_s28 = ssub.s32 %s558_s18, %s744_s23 }
   0xf   : > { %s34_s29 = sor.u32 %s33_s24, %s32_s28  ;;  %p381_p11 = scmp.ge.s32.totalorder %s562_s19, 4 }
  0x10   : > { %p35_p10 = scmp.eq.s32.totalorder %s34_s29, 0 }
  0x11   : > { %146 = sbr.rel (%p381_p11) target bundleno = 34 (0x22), region = 24 }
  0x12   : > { %s657_s4 = scalar_select %p35_p10, %s542_s14, %s37_s30  }
  0x16   : > { %149 = sbr.rel (!%p637_p3) target bundleno = 34 (0x22), region = 28  ;;  %s151_s5 = sand.u32 (%p637_p3), 1, %s542_s14  }
  0x17   : > { %s393_s6 = smul.u32 (%p637_p3), 10, %s558_s18 }
  0x18   : > { %s392_s7 = smul.u32 (%p637_p3), 40, %s151_s5 }
  0x19   : > { %s155_s8 = sadd.s32 (%p637_p3), %s554_s17, %s393_s6 }
  0x1a   : > { %s382_s9 = sshll.u32 (%p637_p3), %s155_s8, 3  ;;  %s153_s21 = scalar_lea.vmem (%p637_p3), [#allocation2], %s392_s7 }
  0x1b   : > { %s157_s20 = scalar_lea.vmem %s725_s0, %s382_s9 }
  0x1c   : > { %v194_v0 = vld [vmem:[%s157_s20] sm:$0xff]  ;;  %v196_v1 = vld [vmem:[%s157_s20 + $0x10] sm:$0xff] }
  0x1d   : > { %v198_v2 = vld [vmem:[%s157_s20 + $0x20] sm:$0xff]  ;;  %195 = vst [vmem:[%s153_s21] sm:$0xff] %v194_v0  ;;  %v200_v3 = vld [vmem:[%s157_s20 + $0x30] sm:$0xff] }
  0x1e   : > { %197 = vst [vmem:[%s153_s21 + $0x8] sm:$0xff] %v196_v1  ;;  %v202_v4 = vld [vmem:[%s157_s20 + $0x40] sm:$0xff] }
  0x1f   : > { %199 = vst [vmem:[%s153_s21 + $0x10] sm:$0xff] %v198_v2 }
  0x20   : > { %201 = vst [vmem:[%s153_s21 + $0x18] sm:$0xff] %v200_v3 }
  0x21   : > { %203 = vst [vmem:[%s153_s21 + $0x20] sm:$0xff] %v202_v4 }
  0x22 PF: > { %p383_p12 = scmp.ge.s32.totalorder %s562_s19, 1  ;;  %p208_p13 = scmp.lt.s32.totalorder %s562_s19, 5 }
  0x24   : > { %p209_p0 = pnand %p383_p12, %p208_p13 }
  0x25   : > { %s671_s24 = sand.u32 (!%p209_p0), 1, %s538_s13   ;;  %s388_s7 = sshll.u32 (!%p209_p0), %s550_s16, 1 }
  0x26   : > { %212 = sbr.rel (%p209_p0) target bundleno = 187 (0xbb), region = 66  ;;  %s291_s8 = sadd.s32 (!%p209_p0), %s546_s15, %s388_s7 }
  0x27   : > { %s394_s29 = smul.u32 (!%p209_p0), 40, %s671_s24  ;;  %s384_s9 = sshll.u32 (!%p209_p0), %s671_s24, 3 }
  0x28   : > { %s389_s10 = sshll.u32 (!%p209_p0), %s291_s8, 3  ;;  %s237_s25 = scalar_lea.vmem (!%p209_p0), [#allocation3], %s384_s9 }
  0x29   : > { %s217_s30 = scalar_lea.vmem (!%p209_p0), [#allocation2], %s394_s29  ;;  %s293_s21 = scalar_lea.hbm (!%p209_p0), %s728_s3, %s389_s10 }
  0x2a   : > { %s295_s28 = sshll.u32 (!%p209_p0), %s237_s25, 4  ;;  %s297_s29 = sshll.u32 (!%p209_p0), %s293_s21, 4  ;;  %s296_s28 = int_to_ptr.vmem [resolvable:$true] %s295_s28  ;;  %s298_s29 = int_to_ptr.hbm [resolvable:$true] %s297_s29 }
  0x2b   : > { %v244_v5 = vld [vmem:[%s727_s2] sm:$0xff]  ;;  %v564_v6 = vmov 0   ;;  %vm254_vm0 = vcmask 1043456   ;;  %v241_v9 = vld [vmem:[%s217_s30 + $0x10] sm:$0xff]  ;;  %v240_v10 = vld [vmem:[%s217_s30 + $0x8] sm:$0xff]  ;;  %vm250_vm1 = vcmask 293888  }
  0x2c   : > { %467 = vset.pattern.permute.xlu0 %v564_v6  ;;  %v243_v7 = vld [vmem:[%s217_s30 + $0x20] sm:$0xf]  ;;  %v242_v8 = vld [vmem:[%s217_s30 + $0x18] sm:$0xff]  ;;  %s482_s16 = sshra.s32 %s298_s29, 4  ;;  %s488_s7 = scalar_lea.hbm %s728_s3, 32  ;;  %s483_s16 = int_to_ptr.hbm [resolvable:$true] %s482_s16 }
  0x2d   : > { %247 = vperm.xlu0 %467, %v244_v5   ;;  %385 = vmatpush.msk.msra.mxu0 %vm254_vm0, %v243_v7  ;;  %v239_v11 = vld [vmem:[%s217_s30] sm:$0xff]  ;;  %s281_s30 = scalar_lea.sflag [#allocation4], %s671_s24  ;;  %s484_s15 = scalar_lea.hbm %s483_s16, 8 }
  0x2e   : > { %v238_v12 = vld [vmem:[%s726_s1] sm:$0xff]  ;;  %p485_p1 = scmp.ne.s32.totalorder %s483_s16, %s484_s15  ;;  %p489_p4 = scmp.lt.s32.totalorder %s483_s16, %s728_s3 }
  0x2f   : > { %270 = vmatpush.msra.mxu0 %v242_v8  ;;  %p490_p5 = scmp.lt.s32.totalorder %s488_s7, %s484_s15 }
  0x30   : > { %p486_p2 = pnand %p485_p1, %p645_p8 }
  0x31   : > { %271 = vmatpush.msra.mxu0 %v241_v9  ;;  %p491_p6 = por %p490_p5, %p489_p4 }
  0x32   : > { %p487_p3 = pneg %p486_p2 }
  0x33   : > { %272 = vmatpush.msra.mxu0 %v240_v10 }
  0x34   : > { %p492_p7 = pnand %p491_p6, %p487_p3 }
  0x35   : > { %273 = vmatpush.msra.mxu0 %v239_v11 }
  0x36   : > { %386 = vmatmul.msk.f32.vlgmr.msra.gmra.mxu0 %vm250_vm1, %v238_v12 }
  0x9f   : > { %v248_v13 = vpop.permute.xlu0 %247 }
  0xb3   : > { %v275_v14 = vpop.f32.mrf.mxu0 }
  0xb4   : > { %v276_v15 = vadd.f32 %v275_v14, %v248_v13 }
  0xb6   : > { %v278_v16 = vmax.f32 %v276_v15, 0.0 }
  0xb8   : > { %279 = vst [vmem:[%s237_s25] sm:$0xff] %v278_v16 }
  0xb9   : > { %495 = shalt.err (!%p492_p7)
}
  0xba   : > { %395 = dma.vmem_to_hbm [thread:$0]  (%p645_p8), %s296_s28, 128, %s298_s29, %s281_s30  }
  0xbb PF: > { %p401_p10 = scmp.ge.s32.totalorder %s562_s19, 2  ;;  %s309_s24 = sand.u32 1, %s534_s12  }
  0xbc   : > { %s310_s10 = scalar_lea.sflag [#allocation4], %s309_s24 }
  0xbd   : > { %p398_p11 = pnand %p401_p10, %p649_p9 }
  0xbf   : > { %p399_p12 = pneg %p398_p11 }
  0xc1   : > { %529 = dma.done.wait (%p399_p12), %s310_s10, 128  }
  0xc2   : > { %531 = vsyncadd (%p399_p12), %s310_s10, 4294967168  ;;  %s16_s19 = sadd.s32 1, %s562_s19   ;;  %s732_s12 = smov %s538_s13 }
  0xc3   : > { %p13_p13 = scmp.ge.s32.totalorder %s16_s19, 6   ;;  %s733_s13 = smov %s542_s14 }
  0xc4   : > { %s734_s14 = smov %s657_s4  ;;  %s735_s15 = smov %s554_s17 }
  0xc5   : > { %s736_s16 = smov %s558_s18  ;;  %s737_s17 = smov %s740_s22 }
  0xc6   : > { %s738_s18 = smov %s744_s23  ;;  %15 = sbr.rel (!%p13_p13) target bundleno = 5 (0x5), region = 110 }
  0xcb   :  { %316 = vsyncpa [#allocation4], 1 }
  0xcc   :  { %318 = vsyncpa [#allocation4 + $0x1], 1 }

</bundles_post_ra>
